<compile_context>
chip_gen: v7x
topology: tpu7x:2x2x1
jax: 0.10.0
libtpu: 0.0.40
codegen_flags: <defaults>
</compile_context>

<pallas_src>
import jax
import jax.numpy as jnp
from jax.experimental import pallas as pl
from jax.experimental.pallas import tpu as pltpu


def _round_up(x: int, m: int) -> int:
    return (x + m - 1) // m * m


def _mlp_kernel(x_ref, w1_ref, b1_ref, w2_ref, b2_ref, o_ref):
    # fc1: [TB, D](bf16) @ [D, H](bf16) -> f32 accumulator (MXU)
    h = jnp.dot(x_ref[...], w1_ref[...], preferred_element_type=jnp.float32)
    # bias + ReLU on the f32 accumulator (VPU)
    h = jnp.maximum(h + b1_ref[...], 0.0)
    # fc2: [TB, H](bf16) @ [H, Cp](bf16) -> f32 accumulator (MXU)
    out = jnp.dot(h.astype(w2_ref.dtype), w2_ref[...],
                  preferred_element_type=jnp.float32)
    out = out + b2_ref[...]
    # Lane-dense store: Cp is a multiple of 128 (or the full, unpadded C).
    o_ref[...] = out.astype(o_ref.dtype)


def simple_nn_forward(x, w1, b1, w2, b2, *, tb_max: int = 512):
    """Fused forward pass of SimpleNN.

    x:  [B, input_size]
    w1: [input_size, hidden_size], b1: [hidden_size]
    w2: [hidden_size, num_classes], b2: [num_classes]
    returns: [B, num_classes] in x.dtype
    """
    B, D = x.shape
    H = w1.shape[1]
    C = w2.shape[1]
    out_dtype = x.dtype

    # ---- batch tiling: TB multiple of 16 (bf16 packing), capped at tb_max ----
    TB = min(_round_up(tb_max, 16), _round_up(B, 16))
    B_pad = _round_up(B, TB)
    nb = B_pad // TB

    # ---- lane-dense output: pad num_classes to a multiple of 128 ----
    Cp = _round_up(C, 128)

    # ---- bf16 MXU feeds; zero-pad x rows and w2/b2 columns only if needed ----
    xb = x.astype(jnp.bfloat16)
    if B_pad != B:
        x_p = jnp.zeros((B_pad, D), jnp.bfloat16).at[:B, :].set(xb)
    else:
        x_p = xb
    w1_b = w1.astype(jnp.bfloat16)
    b1_2d = b1.astype(jnp.float32).reshape(1, H)
    if Cp != C:
        w2_p = jnp.zeros((H, Cp), jnp.bfloat16).at[:, :C].set(w2.astype(jnp.bfloat16))
        b2_2d = jnp.zeros((1, Cp), jnp.float32).at[:, :C].set(b2.astype(jnp.float32))
    else:
        w2_p = w2.astype(jnp.bfloat16)
        b2_2d = b2.astype(jnp.float32).reshape(1, Cp)

    # ---- cost hint for the XLA scheduler ----
    flops = 2 * B_pad * D * H + 2 * B_pad * H * Cp
    bytes_accessed = (
        x_p.size * 2 + w1_b.size * 2 + b1_2d.size * 4
        + w2_p.size * 2 + b2_2d.size * 4
        + B_pad * Cp * jnp.dtype(out_dtype).itemsize
    )
    cost = pl.CostEstimate(flops=flops, transcendentals=0,
                           bytes_accessed=bytes_accessed)

    out_padded = pl.pallas_call(
        _mlp_kernel,
        out_shape=jax.ShapeDtypeStruct((B_pad, Cp), out_dtype),
        grid_spec=pltpu.PrefetchScalarGridSpec(
            num_scalar_prefetch=0,
            grid=(nb,),
            in_specs=[
                pl.BlockSpec((TB, D), lambda i: (i, 0)),   # x: streamed per tile
                pl.BlockSpec((D, H), lambda i: (0, 0)),    # w1: resident
                pl.BlockSpec((1, H), lambda i: (0, 0)),    # b1: resident
                pl.BlockSpec((H, Cp), lambda i: (0, 0)),   # w2: resident (padded)
                pl.BlockSpec((1, Cp), lambda i: (0, 0)),   # b2: resident (padded)
            ],
            out_specs=pl.BlockSpec((TB, Cp), lambda i: (i, 0)),
        ),
        compiler_params=pltpu.CompilerParams(
            dimension_semantics=("parallel",),   # 2 TCs on v7x; free on v5e/v6e
            vmem_limit_bytes=64 << 20,           # within v7x's 64 MiB physical VMEM
        ),
        cost_estimate=cost,
    )(x_p, w1_b, b1_2d, w2_p, b2_2d)

    # Slice away batch padding and the lane-padded class columns.
    if B_pad != B or Cp != C:
        out_padded = out_padded[:B, :C]
    return out_padded


def init_params(key, input_size, hidden_size, num_classes, dtype=jnp.float32):
    # Deterministic init (uniform, torch.nn.Linear-style bounds).
    k1, k2, k3, k4 = jax.random.split(key, 4)
    lim1 = 1.0 / jnp.sqrt(input_size)
    lim2 = 1.0 / jnp.sqrt(hidden_size)
    w1 = jax.random.uniform(k1, (input_size, hidden_size), dtype, -lim1, lim1)
    b1 = jax.random.uniform(k2, (hidden_size,), dtype, -lim1, lim1)
    w2 = jax.random.uniform(k3, (hidden_size, num_classes), dtype, -lim2, lim2)
    b2 = jax.random.uniform(k4, (num_classes,), dtype, -lim2, lim2)
    return w1, b1, w2, b2


if __name__ == "__main__":
    key = jax.random.PRNGKey(0)
    batch, input_size, hidden_size, num_classes = 8, 32, 64, 10

    kx, kp = jax.random.split(key)
    x = jax.random.normal(kx, (batch, input_size), jnp.float32)
    w1, b1, w2, b2 = init_params(kp, input_size, hidden_size, num_classes)

    out = simple_nn_forward(x, w1, b1, w2, b2)
    jax.block_until_ready(out)
    assert out.shape == (batch, num_classes)

    # Reference in plain JAX with matching precision (bf16 inputs, f32 accumulate).
    xb = x.astype(jnp.bfloat16)
    w1b = w1.astype(jnp.bfloat16)
    w2b = w2.astype(jnp.bfloat16)
    h_ref = jnp.maximum(
        jnp.dot(xb, w1b, preferred_element_type=jnp.float32) + b1, 0.0)
    ref = jnp.dot(h_ref.astype(jnp.bfloat16), w2b,
                  preferred_element_type=jnp.float32) + b2
    assert jnp.allclose(out.astype(jnp.float32), ref, atol=1e-2, rtol=1e-2)

    # Sanity check against the full-f32 reference (loose tolerance for bf16 matmuls).
    ref_f32 = jnp.maximum(x @ w1 + b1, 0.0) @ w2 + b2
    assert jnp.allclose(out.astype(jnp.float32), ref_f32, atol=5e-2, rtol=5e-2)

    print("KERNEL_OK")
</pallas_src>

<mosaic_0001>
module attributes {stable_mosaic.version = 11 : i64} {
  func.func @_mlp_kernel(%arg0: i32, %arg1: memref<16x32xbf16, #tpu.memory_space<vmem>>, %arg2: memref<32x64xbf16, #tpu.memory_space<vmem>>, %arg3: memref<1x64xf32, #tpu.memory_space<vmem>>, %arg4: memref<64x128xbf16, #tpu.memory_space<vmem>>, %arg5: memref<1x128xf32, #tpu.memory_space<vmem>>, %arg6: memref<16x128xf32, #tpu.memory_space<vmem>>) attributes {dimension_semantics = [#tpu.dimension_semantics<parallel>], iteration_bounds = array<i64: 1>, scalar_prefetch = 0 : i64, scratch_operands = 0 : i64, tpu.core_type = #tpu.core_type<tc>, window_params = [{transform_indices = @transform_0, window_bounds = array<i64: 16, 32>}, {pipeline_mode = #tpu.pipeline_mode<synchronous>, transform_indices = @transform_1, window_bounds = array<i64: 32, 64>}, {pipeline_mode = #tpu.pipeline_mode<synchronous>, transform_indices = @transform_2, window_bounds = array<i64: 1, 64>}, {pipeline_mode = #tpu.pipeline_mode<synchronous>, transform_indices = @transform_3, window_bounds = array<i64: 64, 128>}, {pipeline_mode = #tpu.pipeline_mode<synchronous>, transform_indices = @transform_4, window_bounds = array<i64: 1, 128>}, {transform_indices = @transform_5, window_bounds = array<i64: 16, 128>}]} {
    %c0 = arith.constant 0 : index
    %c0_0 = arith.constant 0 : index
    %0 = vector.load %arg1[%c0, %c0_0] : memref<16x32xbf16, #tpu.memory_space<vmem>>, vector<16x32xbf16>
    %c0_1 = arith.constant 0 : index
    %c0_2 = arith.constant 0 : index
    %1 = vector.load %arg2[%c0_1, %c0_2] : memref<32x64xbf16, #tpu.memory_space<vmem>>, vector<32x64xbf16>
    %cst = arith.constant dense<0.000000e+00> : vector<16x64xf32>
    %2 = tpu.matmul %0, %1, %cst {dimension_numbers = #tpu.dot_dimension_numbers<[1], [0], [0], [1], [0, 0, 1, 1], [], []>} : vector<16x32xbf16>, vector<32x64xbf16>, vector<16x64xf32> -> vector<16x64xf32>
    %c0_3 = arith.constant 0 : index
    %c0_4 = arith.constant 0 : index
    %3 = vector.load %arg3[%c0_3, %c0_4] : memref<1x64xf32, #tpu.memory_space<vmem>>, vector<1x64xf32>
    %4 = vector.broadcast %3 : vector<1x64xf32> to vector<16x64xf32>
    %5 = arith.addf %2, %4 : vector<16x64xf32>
    %cst_5 = arith.constant 0.000000e+00 : f32
    %6 = vector.broadcast %cst_5 : f32 to vector<16x64xf32>
    %7 = arith.maximumf %5, %6 : vector<16x64xf32>
    %8 = arith.truncf %7 : vector<16x64xf32> to vector<16x64xbf16>
    %c0_6 = arith.constant 0 : index
    %c0_7 = arith.constant 0 : index
    %9 = vector.load %arg4[%c0_6, %c0_7] : memref<64x128xbf16, #tpu.memory_space<vmem>>, vector<64x128xbf16>
    %cst_8 = arith.constant dense<0.000000e+00> : vector<16x128xf32>
    %10 = tpu.matmul %8, %9, %cst_8 {dimension_numbers = #tpu.dot_dimension_numbers<[1], [0], [0], [1], [0, 0, 1, 1], [], []>} : vector<16x64xbf16>, vector<64x128xbf16>, vector<16x128xf32> -> vector<16x128xf32>
    %c0_9 = arith.constant 0 : index
    %c0_10 = arith.constant 0 : index
    %11 = vector.load %arg5[%c0_9, %c0_10] : memref<1x128xf32, #tpu.memory_space<vmem>>, vector<1x128xf32>
    %12 = vector.broadcast %11 : vector<1x128xf32> to vector<16x128xf32>
    %13 = arith.addf %10, %12 : vector<16x128xf32>
    %c0_11 = arith.constant 0 : index
    %c0_12 = arith.constant 0 : index
    %14 = vector.load %arg6[%c0_11, %c0_12] : memref<16x128xf32, #tpu.memory_space<vmem>>, vector<16x128xf32>
    tpu.vector_store %arg6[%c0_11, %c0_12], %13 {strides = array<i32>} : memref<16x128xf32, #tpu.memory_space<vmem>>, vector<16x128xf32>,
    return
  }
  func.func @transform_0(%arg0: i32) -> (i32, i32) {
    %c0_i32 = arith.constant 0 : i32
    %c0_i32_0 = arith.constant 0 : i32
    return %arg0, %c0_i32 : i32, i32
  }
  func.func @transform_1(%arg0: i32) -> (i32, i32) {
    %c0_i32 = arith.constant 0 : i32
    %c0_i32_0 = arith.constant 0 : i32
    %c0_i32_1 = arith.constant 0 : i32
    return %c0_i32, %c0_i32_0 : i32, i32
  }
  func.func @transform_2(%arg0: i32) -> (i32, i32) {
    %c0_i32 = arith.constant 0 : i32
    %c0_i32_0 = arith.constant 0 : i32
    %c0_i32_1 = arith.constant 0 : i32
    return %c0_i32, %c0_i32_0 : i32, i32
  }
  func.func @transform_3(%arg0: i32) -> (i32, i32) {
    %c0_i32 = arith.constant 0 : i32
    %c0_i32_0 = arith.constant 0 : i32
    %c0_i32_1 = arith.constant 0 : i32
    return %c0_i32, %c0_i32_0 : i32, i32
  }
  func.func @transform_4(%arg0: i32) -> (i32, i32) {
    %c0_i32 = arith.constant 0 : i32
    %c0_i32_0 = arith.constant 0 : i32
    %c0_i32_1 = arith.constant 0 : i32
    return %c0_i32, %c0_i32_0 : i32, i32
  }
  func.func @transform_5(%arg0: i32) -> (i32, i32) {
    %c0_i32 = arith.constant 0 : i32
    %c0_i32_0 = arith.constant 0 : i32
    return %arg0, %c0_i32 : i32, i32
  }
}

</mosaic_0001>

<bundles_post_ra>
// kernel: tpu_custom_call.1
= control target key start
LH: loop header
LB: loop body
LE: loop exit
PB: predicated region body
PF: predicated region fallthrough
CT: control target
= control target key end

     0   :  { %10 = vsyncpa [#allocation3], 0  ;;  %s597_s0 = inlined_call_operand.hbm [shape: bf16[16,32], index: 0, kind: input, shape index: {}]   ;;  %s598_s1 = inlined_call_operand.hbm [shape: bf16[32,64], index: 1, kind: input, shape index: {}]   ;;  %s599_s2 = inlined_call_operand.hbm [shape: f32[1,64], index: 2, kind: input, shape index: {}]   ;;  %s600_s3 = inlined_call_operand.hbm [shape: bf16[64,128], index: 3, kind: input, shape index: {}]   ;;  %s601_s4 = inlined_call_operand.hbm [shape: f32[1,128], index: 4, kind: input, shape index: {}]   ;;  %s602_s5 = inlined_call_operand.hbm [shape: f32[16,128], index: 5, kind: output, shape index: {}]  }
   0x1   :  { %11 = vsyncpa [#allocation6], 0 }
   0x2   :  { %12 = vsyncpa [#allocation9], 0 }
   0x3   :  { %13 = vsyncpa [#allocation4], 0  ;;  %s467_s18 = smov [#allocation5]   ;;  %s468_s20 = smov [#allocation8]  }
   0x4   :  { %s31_s19 = sshll.u32 %s467_s18, 4  ;;  %s53_s21 = sshll.u32 %s468_s20, 4  ;;  %s32_s19 = int_to_ptr.vmem [resolvable:$true] %s31_s19  ;;  %s509_s21 = int_to_ptr.vmem [resolvable:$true] %s53_s21 }
   0x5   :  { %s327_s24 = scalar_lea.hbm %s598_s1, 256 }
   0x6   :  { %p328_p0 = scmp.ne.s32.totalorder %s598_s1, %s327_s24  ;;  %p331_p1 = scmp.lt.u32.totalorder %s327_s24, %s598_s1 }
   0x8   :  { %p333_p2 = pnand %p331_p1, %p328_p0 }
   0xa   :  { %336 = shalt.err (!%p333_p2)
}
   0xb   :  { %s337_s29 = scalar_lea.vmem %s32_s19, 256  ;;  %p342_p4 = scmp.lt.s32.totalorder %s32_s19, %s32_s19 }
   0xc   :  { %p338_p3 = scmp.ne.s32.totalorder %s32_s19, %s337_s29  ;;  %p343_p5 = scmp.lt.s32.totalorder %s337_s29, %s337_s29 }
   0xe   :  { %p344_p6 = por %p343_p5, %p342_p4 }
  0x10   :  { %p345_p7 = pnand %p344_p6, %p338_p3 }
  0x12   :  { %348 = shalt.err (!%p345_p7)
}
  0x13   :  { %s469_s30 = smov 64   ;;  %s470_s6 = smov 4  }
  0x14   :  { %37 = dma.hbm_to_vmem [thread:$0]  %s598_s1, 256, %s32_s19, [#allocation6], %s469_s30, %s469_s30, %s470_s6  }
  0x15   :  { %s349_s11 = scalar_lea.hbm %s600_s3, 512 }
  0x16   :  { %p350_p8 = scmp.ne.s32.totalorder %s600_s3, %s349_s11  ;;  %p353_p9 = scmp.lt.u32.totalorder %s349_s11, %s600_s3 }
  0x18   :  { %p355_p10 = pnand %p353_p9, %p350_p8 }
  0x1a   :  { %358 = shalt.err (!%p355_p10)
}
  0x1b   :  { %s359_s16 = scalar_lea.vmem %s509_s21, 512  ;;  %p364_p12 = scmp.lt.s32.totalorder %s509_s21, %s509_s21 }
  0x1c   :  { %p360_p11 = scmp.ne.s32.totalorder %s509_s21, %s359_s16  ;;  %p365_p13 = scmp.lt.s32.totalorder %s359_s16, %s359_s16 }
  0x1e   :  { %p366_p0 = por %p365_p13, %p364_p12 }
  0x20   :  { %p367_p1 = pnand %p366_p0, %p360_p11 }
  0x22   :  { %370 = shalt.err (!%p367_p1)
}
  0x23   :  { %59 = dma.hbm_to_vmem [thread:$0]  %s600_s3, 512, %s509_s21, [#allocation9], %s469_s30, %s469_s30, %s470_s6  }
  0x24   :  { %s471_s18 = smov [#allocation2]   ;;  %s472_s20 = smov [#allocation7]  }
  0x25   :  { %s19_s19 = sshll.u32 %s471_s18, 4  ;;  %s44_s22 = sshll.u32 %s472_s20, 4  ;;  %s20_s19 = int_to_ptr.vmem [resolvable:$true] %s19_s19  ;;  %s45_s22 = int_to_ptr.vmem [resolvable:$true] %s44_s22 }
  0x26   :  { %s371_s25 = scalar_lea.hbm %s597_s0, 128 }
  0x27   :  { %p372_p2 = scmp.ne.s32.totalorder %s597_s0, %s371_s25  ;;  %p375_p3 = scmp.lt.u32.totalorder %s371_s25, %s597_s0 }
  0x29   :  { %p377_p4 = pnand %p375_p3, %p372_p2 }
  0x2b   :  { %380 = shalt.err (!%p377_p4)
}
  0x2c   :  { %s381_s3 = scalar_lea.vmem %s20_s19, 128  ;;  %p386_p6 = scmp.lt.s32.totalorder %s20_s19, %s20_s19 }
  0x2d   :  { %p382_p5 = scmp.ne.s32.totalorder %s20_s19, %s381_s3  ;;  %p387_p7 = scmp.lt.s32.totalorder %s381_s3, %s381_s3 }
  0x2f   :  { %p388_p8 = por %p387_p7, %p386_p6 }
  0x31   :  { %p389_p9 = pnand %p388_p8, %p382_p5 }
  0x33   :  { %392 = shalt.err (!%p389_p9)
}
  0x34   :  { %25 = dma.hbm_to_vmem [thread:$0]  %s597_s0, 128, %s20_s19, [#allocation3], %s469_s30, %s469_s30, %s470_s6  }
  0x35   :  { %s393_s10 = scalar_lea.hbm %s599_s2, 16 }
  0x36   :  { %p394_p10 = scmp.ne.s32.totalorder %s599_s2, %s393_s10  ;;  %p397_p11 = scmp.lt.u32.totalorder %s393_s10, %s599_s2 }
  0x38   :  { %p399_p12 = pnand %p397_p11, %p394_p10 }
  0x3a   :  { %402 = shalt.err (!%p399_p12)
}
  0x3b   :  { %s403_s15 = scalar_lea.vmem %s45_s22, 16  ;;  %s407_s16 = scalar_lea.vmem %s45_s22, 32 }
  0x3c   :  { %p404_p13 = scmp.ne.s32.totalorder %s45_s22, %s403_s15  ;;  %p408_p0 = scmp.lt.s32.totalorder %s45_s22, %s45_s22 }
  0x3d   :  { %p409_p1 = scmp.lt.s32.totalorder %s407_s16, %s403_s15 }
  0x3f   :  { %p410_p2 = por %p409_p1, %p408_p0 }
  0x41   :  { %p411_p3 = pnand %p410_p2, %p404_p13 }
  0x43   :  { %414 = shalt.err (!%p411_p3)
}
  0x44   :  { %47 = dma.hbm_to_vmem [thread:$0]  %s599_s2, 16, %s45_s22, [#allocation6]  }
  0x45   :  { %s473_s6 = smov [#allocation10]   ;;  %s415_s19 = scalar_lea.hbm %s601_s4, 16 }
  0x46   :  { %s66_s1 = sshll.u32 %s473_s6, 4  ;;  %p416_p4 = scmp.ne.s32.totalorder %s601_s4, %s415_s19  ;;  %s67_s1 = int_to_ptr.vmem [resolvable:$true] %s66_s1 }
  0x47   :  { %p419_p5 = scmp.lt.u32.totalorder %s415_s19, %s601_s4 }
  0x49   :  { %p421_p6 = pnand %p419_p5, %p416_p4 }
  0x4b   :  { %424 = shalt.err (!%p421_p6)
}
  0x4c   :  { %s425_s26 = scalar_lea.vmem %s67_s1, 16  ;;  %s429_s2 = scalar_lea.vmem %s67_s1, 32 }
  0x4d   :  { %p426_p7 = scmp.ne.s32.totalorder %s67_s1, %s425_s26  ;;  %p430_p8 = scmp.lt.s32.totalorder %s67_s1, %s67_s1 }
  0x4e   :  { %p431_p9 = scmp.lt.s32.totalorder %s429_s2, %s425_s26 }
  0x50   :  { %p432_p10 = por %p431_p9, %p430_p8 }
  0x52   :  { %p433_p11 = pnand %p432_p10, %p426_p7 }
  0x54   :  { %436 = shalt.err (!%p433_p11)
}
  0x55   :  { %69 = dma.hbm_to_vmem [thread:$0]  %s601_s4, 16, %s67_s1, [#allocation9]  }
  0x56   :  { %459 = dma.done.wait [#allocation3], 128  }
  0x57   :  { %460 = vsyncadd [#allocation3], 4294967168 }
  0x58   :  { %461 = dma.done.wait [#allocation6], 272  }
  0x59   :  { %462 = vsyncadd [#allocation6], 4294967024 }
  0x5a   :  { %463 = dma.done.wait [#allocation9], 528  }
  0x5b   :  { %464 = vsyncadd [#allocation9], 4294966768  ;;  %v474_v0 = vmov 0.0   ;;  %vm475_vm0 = vmmov 0   ;;  %v320_v1 = vld [vmem:[#allocation5] sm:$0xff]   ;;  %v321_v2 = vld [vmem:[#allocation5 + $0x8] sm:$0xff]  }
  0x5c   :  { %288 = vmatprep.subr.bf16.mxu0 %v474_v0  ;;  %292 = vmatprep.mubr.msk.bf16.mxu0 %vm475_vm0, %v474_v0  ;;  %v323_v3 = vld [vmem:[#allocation8] sm:$0xff]   ;;  %v324_v5 = vld [vmem:[#allocation8 + $0x8] sm:$0xff]   ;;  %vm116_vm1 = vcmask 261120   ;;  %v325_v6 = vld [vmem:[#allocation8 + $0x10] sm:$0xff]   ;;  %vm203_vm2 = vcmask 523264   ;;  %s476_s4 = smov [#allocation11]  }
  0x5d   :  { %296 = vmatprep.subr.bf16.mxu1 %v474_v0  ;;  %304 = vmatprep.mubr.msk.bf16.mxu1 %vm475_vm0, %v474_v0  ;;  %v322_v4 = vld [vmem:[#allocation2] sm:$0xff]   ;;  %v326_v7 = vld [vmem:[#allocation8 + $0x18] sm:$0xff]   ;;  %v274_v18 = vld [vmem:[#allocation10] ss:$0 sm:$0xff]  ;;  %s255_s28 = sshll.u32 %s476_s4, 4  ;;  %s256_s28 = int_to_ptr.vmem [resolvable:$true] %s255_s28 }
  0x5e   :  { %289 = vmatpush3.bf16.msra.mxu0 %v320_v1  ;;  %297 = vmatpush3.bf16.msra.mxu1 %v323_v3  ;;  %v269_v8 = vld [vmem:[#allocation7] ss:$0 sm:$0xff]  ;;  %s437_s29 = scalar_lea.vmem %s256_s28, 256  ;;  %p442_p13 = scmp.lt.s32.totalorder %s256_s28, %s256_s28 }
  0x5f   :  { %290 = vmatprep.subr.bf16.mxu0 %v474_v0  ;;  %298 = vmatprep.subr.bf16.mxu1 %v474_v0  ;;  %p438_p12 = scmp.ne.s32.totalorder %s256_s28, %s437_s29  ;;  %p443_p0 = scmp.lt.s32.totalorder %s437_s29, %s437_s29 }
  0x61   :  { %p444_p1 = por %p443_p0, %p442_p13 }
  0x62   :  { %291 = vmatpush3.bf16.msra.mxu0 %v321_v2  ;;  %299 = vmatpush3.bf16.msra.mxu1 %v324_v5 }
  0x63   :  { %300 = vmatprep.subr.bf16.mxu1 %v474_v0  ;;  %p445_p2 = pnand %p444_p1, %p438_p12 }
  0x65   :  { %293 = vmatmul.mubr.msk.bf16.vlgmr.msra.gmra.mrb[0].mxu0 %vm116_vm1, %v322_v4 }
  0x66   :  { %301 = vmatpush3.bf16.msra.mxu1 %v325_v6 }
  0x67   :  { %302 = vmatprep.subr.bf16.mxu1 %v474_v0 }
  0x6a   :  { %303 = vmatpush3.bf16.msra.mxu1 %v326_v7 }
 0x138   :  { %v154_v9 = vpop.f32.mrb[0].mxu0 }
 0x139   :  { %v155_v10 = vadd.f32 %v269_v8, %v154_v9  ;;  %v294_v11 = vpop.f32.mrb[1].mxu0 }
 0x13a   :  { %v157_v12 = vpop.f32.mrb[2].mxu0 }
 0x13b   :  { %v158_v13 = vadd.f32 %v269_v8, %v157_v12  ;;  %v295_v14 = vpop.f32.mrb[3].mxu0  ;;  %v161_v15 = vmax.f32 %v155_v10, 0.0 }
 0x13d   :  { %v162_v16 = vmax.f32 %v158_v13, 0.0 }
 0x13f   :  { %v163_v17 = vpack.c.bf16 %v162_v16, %v161_v15 }
 0x141   :  { %305 = vmatmul.mubr.msk.bf16.vlgmr.msra.gmra.mrb[0].mxu1 %vm203_vm2, %v163_v17 }
 0x214   :  { %v241_v19 = vpop.f32.mrb[0].mxu1 }
 0x215   :  { %v242_v20 = vadd.f32 %v274_v18, %v241_v19  ;;  %v306_v21 = vpop.f32.mrb[1].mxu1 }
 0x216   :  { %v244_v22 = vpop.f32.mrb[2].mxu1 }
 0x217   :  { %248 = vst [vmem:[#allocation11] sm:$0xff] %v242_v20  ;;  %v245_v23 = vadd.f32 %v274_v18, %v244_v22  ;;  %v307_v24 = vpop.f32.mrb[3].mxu1 }
 0x219   :  { %249 = vst [vmem:[#allocation11 + $0x8] sm:$0xff] %v245_v23 }
 0x21a   :  { %448 = shalt.err (!%p445_p2)
}
 0x21b   :  { %s449_s7 = scalar_lea.hbm %s602_s5, 256 }
 0x21c   :  { %p450_p3 = scmp.ne.s32.totalorder %s602_s5, %s449_s7  ;;  %p453_p4 = scmp.lt.u32.totalorder %s449_s7, %s602_s5 }
 0x21e   :  { %p455_p5 = pnand %p453_p4, %p450_p3 }
 0x220   :  { %458 = shalt.err (!%p455_p5)
}
 0x221   :  { %s477_s12 = smov 128   ;;  %s478_s13 = smov 8  }
 0x222   :  { %261 = dma.vmem_to_hbm [thread:$0]  %s256_s28, 256, %s602_s5, [#allocation4], %s477_s12, %s477_s12, %s478_s13  }
 0x223   :  { %465 = dma.done.wait [#allocation4], 256  }
 0x224   :  { %466 = vsyncadd [#allocation4], 4294967040 }
 0x225   :  { %265 = vsyncpa [#allocation3], 1 }
 0x226   :  { %266 = vsyncpa [#allocation6], 1 }
 0x227   :  { %267 = vsyncpa [#allocation9], 1 }
 0x228   :  { %268 = vsyncpa [#allocation4], 1 }

</bundles_post_ra>
